<compile_context>
chip_gen: v7x
topology: tpu7x:2x2x1
jax: 0.10.0
libtpu: 0.0.40
codegen_flags: <defaults>
</compile_context>

<pallas_src>
import functools

import numpy as np

import jax
import jax.numpy as jnp
from jax.experimental import pallas as pl
from jax.experimental.pallas import tpu as pltpu

LANE = 128     # vreg lane width   (last dim)
SUBLANE = 8    # f32 sublane width (second-to-last dim)


def _round_up(x, m):
    return ((x + m - 1) // m) * m


# ----------------------------------------------------------------------------
# Pallas kernel: the entire decoder as one fused GEMM chain, tiled over batch.
# ----------------------------------------------------------------------------
def _fused_chain_kernel(*refs, acts):
    """refs = (x_ref, M_0, b_0, M_1, b_1, ..., M_{L-1}, b_{L-1}, out_ref).

    x block: (TB, K0_pad) f32.  Weights M_l may be bf16 (native MXU path);
    bias add, ReLU and the stable sigmoid stay in f32 on the VPU/EUP.
    """
    x = refs[0][...]
    for i, act in enumerate(acts):
        m = refs[1 + 2 * i][...]
        b = refs[2 + 2 * i][...]
        y = jnp.dot(x.astype(m.dtype), m, preferred_element_type=jnp.float32) + b
        if act == "relu":
            x = jnp.maximum(y, 0.0)
        elif act == "sigmoid":
            # numerically stable sigmoid (exp on EUP, never overflows)
            e = jnp.exp(-jnp.abs(y))
            x = jnp.where(y >= 0.0, 1.0 / (1.0 + e), e / (1.0 + e))
        else:
            x = y
    refs[-1][...] = x.astype(refs[-1].dtype)


def fused_chain_pallas(x_pad, mats, biases, acts, *, batch_tile):
    """Single pallas_call computing act_L(... act_1(x @ M_1 + b_1) ... @ M_L + b_L).

    x_pad: (B_pad, K0_pad) f32 with B_pad a multiple of batch_tile.
    mats[l]: (K_pad_l, N_pad_l), biases[l]: (1, N_pad_l) f32.
    """
    assert len(mats) == len(biases) == len(acts)
    B_pad, K0 = x_pad.shape
    assert B_pad % batch_tile == 0
    n_out = mats[-1].shape[1]

    operands = [x_pad]
    in_specs = [pl.BlockSpec((batch_tile, K0), lambda i: (i, 0))]
    for m, b in zip(mats, biases):
        operands += [m, b]
        # Weight/bias blocks are the full arrays and constant across the grid.
        in_specs += [pl.BlockSpec(m.shape, lambda i: (0, 0)),
                     pl.BlockSpec(b.shape, lambda i: (0, 0))]

    return pl.pallas_call(
        functools.partial(_fused_chain_kernel, acts=tuple(acts)),
        out_shape=jax.ShapeDtypeStruct((B_pad, n_out), jnp.float32),
        grid=(B_pad // batch_tile,),
        in_specs=in_specs,
        out_specs=pl.BlockSpec((batch_tile, n_out), lambda i: (i, 0)),
        compiler_params=pltpu.CompilerParams(
            dimension_semantics=("parallel",),          # megacore / v7x 2-TC split
            vmem_limit_bytes=32 * 1024 * 1024),
    )(*operands)


# ----------------------------------------------------------------------------
# Weight preprocessing: ConvTranspose2d -> exact dense matrix + bias map.
# ----------------------------------------------------------------------------
def _deconv_as_matrix(weight, bias, H, W, stride, padding, output_padding):
    """weight: (Cin, Cout, Kh, Kw) [PyTorch ConvTranspose2d layout].

    Returns (T, bias_map, (Cout, Ho, Wo)) with flat_out = flat_in @ T + bias_map
    where flat_in / flat_out are NCHW-flattened per-sample activations.
    """
    Cin, Cout, Kh, Kw = weight.shape
    Sh, Sw = stride
    Ph, Pw = padding
    OPh, OPw = output_padding
    Ho = (H - 1) * Sh - 2 * Ph + Kh + OPh
    Wo = (W - 1) * Sw - 2 * Pw + Kw + OPw

    CI, CO, IH, IW, KH, KW = np.meshgrid(
        np.arange(Cin), np.arange(Cout), np.arange(H), np.arange(W),
        np.arange(Kh), np.arange(Kw), indexing="ij")
    OH = IH * Sh - Ph + KH
    OW = IW * Sw - Pw + KW
    valid = (OH >= 0) & (OH < Ho) & (OW >= 0) & (OW < Wo)
    rows = ((CI * H + IH) * W + IW).ravel().astype(np.int32)
    cols = np.where(valid, (CO * Ho + OH) * Wo + OW, 0).ravel().astype(np.int32)

    vals = weight[CI.ravel().astype(np.int32), CO.ravel().astype(np.int32),
                  KH.ravel().astype(np.int32), KW.ravel().astype(np.int32)]
    vals = vals.astype(jnp.float32) * jnp.asarray(valid.ravel(), jnp.float32)
    # NOTE: must stay .add (duplicate scatter indices for masked entries).
    T = jnp.zeros((Cin * H * W, Cout * Ho * Wo), jnp.float32).at[rows, cols].add(vals)
    bias_map = jnp.repeat(bias.astype(jnp.float32), Ho * Wo)
    return T, bias_map, (Cout, Ho, Wo)


def prepare_decoder_operands(params, deconv_specs, encoder_conv_output_shape,
                             weights_dtype=jnp.bfloat16):
    """Batch-independent weight preprocessing.  Call ONCE per weight update
    (kept OUT of the per-step jitted forward, per the perf review).

    Builds the per-layer GEMM operands, zero-pads every feature dim up to a
    multiple of 128 lanes and casts weights to `weights_dtype` (bf16 by default,
    f32 accumulation in-kernel).
    """
    mats, biases, acts = [], [], []
    # nn.Linear: x @ W.T + b, then ReLU
    for (w, b) in params["mlp"]:
        mats.append(jnp.transpose(w))
        biases.append(b)
        acts.append("relu")
    # ConvTranspose2d stack on NCHW-flattened activations (matches x.view(...))
    C, H, W = encoder_conv_output_shape
    Cout = C
    n = len(deconv_specs)
    for i, (spec, (w, b)) in enumerate(zip(deconv_specs, params["deconv"])):
        T, bmap, (Cout, Ho, Wo) = _deconv_as_matrix(
            w, b, H, W, spec["stride"], spec["padding"], spec["output_padding"])
        mats.append(T)
        biases.append(bmap)
        acts.append("relu" if i < n - 1 else "sigmoid")
        H, W = Ho, Wo

    # Lane-pad feature dims (zero padding => exact semantics: padded columns
    # stay 0 through ReLU and the padded rows of the next matrix are 0).
    dims = [mats[0].shape[0]] + [m.shape[1] for m in mats]
    pdims = [_round_up(d, LANE) for d in dims]
    pmats, pbiases = [], []
    for l, (m, b) in enumerate(zip(mats, biases)):
        Kp, Np = pdims[l], pdims[l + 1]
        mp = jnp.pad(m.astype(jnp.float32),
                     ((0, Kp - m.shape[0]), (0, Np - m.shape[1])))
        bp = jnp.pad(b.astype(jnp.float32).reshape(1, -1),
                     ((0, 0), (0, Np - b.shape[0])))
        pmats.append(mp.astype(weights_dtype))   # bf16 weights -> MXU native
        pbiases.append(bp)                       # bias stays f32 (VPU add in f32)

    out_info = dict(n_out=int(mats[-1].shape[1]),
                    out_chw=(int(Cout), int(H), int(W)),
                    in_dim=int(dims[0]),
                    in_dim_pad=int(pdims[0]))
    return pmats, pbiases, tuple(acts), out_info


# ----------------------------------------------------------------------------
# Architecture derivation (faithful to Decoder.__init__)
# ----------------------------------------------------------------------------
def _get_hw(v):
    if isinstance(v, int):
        return (v, v)
    if len(v) == 1:
        return (v[0], v[0])
    return (v[0], v[1])


def build_decoder_arch(conv_layers_encoder_config, mlp_layers_encoder_config,
                       reparam_size, encoder_conv_output_shape, original_image_dims):
    mlp_nodes = [reparam_size] + list(mlp_layers_encoder_config)[::-1]
    C, Hc, Wc = encoder_conv_output_shape
    assert mlp_layers_encoder_config[0] == C * Hc * Wc

    H, W = original_image_dims
    enc_details = []
    for cfg in conv_layers_encoder_config:
        Kh, Kw = _get_hw(cfg[2])
        Sh, Sw = _get_hw(cfg[3])
        Ph, Pw = _get_hw(cfg[4])
        Ho = (H + 2 * Ph - Kh) // Sh + 1
        Wo = (W + 2 * Pw - Kw) // Sw + 1
        enc_details.append(dict(H_in=H, W_in=W, Kh=Kh, Kw=Kw, Sh=Sh, Sw=Sw,
                                Ph=Ph, Pw=Pw, in_c=cfg[0], out_c=cfg[1]))
        H, W = Ho, Wo
    assert H == Hc and W == Wc, (H, W, Hc, Wc)

    deconv_specs = []
    H_in, W_in = Hc, Wc
    for i in range(len(enc_details)):
        d = enc_details[len(enc_details) - 1 - i]
        Ht, Wt = d["H_in"], d["W_in"]
        op_h = Ht - ((H_in - 1) * d["Sh"] - 2 * d["Ph"] + d["Kh"])
        op_w = Wt - ((W_in - 1) * d["Sw"] - 2 * d["Pw"] + d["Kw"])
        op_h = max(0, min(op_h, d["Sh"] - 1 if d["Sh"] > 0 else 0))
        op_w = max(0, min(op_w, d["Sw"] - 1 if d["Sw"] > 0 else 0))
        deconv_specs.append(dict(in_c=d["out_c"], out_c=d["in_c"],
                                 kernel=(d["Kh"], d["Kw"]), stride=(d["Sh"], d["Sw"]),
                                 padding=(d["Ph"], d["Pw"]),
                                 output_padding=(op_h, op_w)))
        H_in, W_in = Ht, Wt
    return mlp_nodes, deconv_specs


def init_params(mlp_nodes, deconv_specs, key):
    params = {"mlp": [], "deconv": []}
    for i in range(len(mlp_nodes) - 1):
        din, dout = mlp_nodes[i], mlp_nodes[i + 1]
        key, kw, kb = jax.random.split(key, 3)
        params["mlp"].append((0.1 * jax.random.normal(kw, (dout, din), jnp.float32),
                              0.1 * jax.random.normal(kb, (dout,), jnp.float32)))
    for spec in deconv_specs:
        Kh, Kw = spec["kernel"]
        key, kw_, kb = jax.random.split(key, 3)
        params["deconv"].append((
            0.1 * jax.random.normal(kw_, (spec["in_c"], spec["out_c"], Kh, Kw), jnp.float32),
            0.1 * jax.random.normal(kb, (spec["out_c"],), jnp.float32)))
    return params


# ----------------------------------------------------------------------------
# Decoder forward passes (fused Pallas + pure-JAX reference)
# ----------------------------------------------------------------------------
def decoder_forward(z, pmats, pbiases, *, acts, out_info, batch_tile=None):
    """Per-step forward: pad z, run the fused kernel, slice + reshape to NCHW."""
    B = z.shape[0]
    K0, K0p = out_info["in_dim"], out_info["in_dim_pad"]
    if batch_tile is None:
        # Fill MXU rows: tile B at 128 when large, otherwise pad to the sublane.
        batch_tile = 128 if B >= 128 else _round_up(B, SUBLANE)
    B_pad = _round_up(B, batch_tile)

    z_pad = jnp.pad(z.astype(jnp.float32), ((0, B_pad - B), (0, K0p - K0)))
    y = fused_chain_pallas(z_pad, pmats, pbiases, acts, batch_tile=batch_tile)

    C, H, W = out_info["out_chw"]
    return y[:B, :out_info["n_out"]].reshape(B, C, H, W)   # NCHW, as PyTorch returns


def decoder_forward_ref(z, params, deconv_specs, encoder_conv_output_shape):
    x = z
    for (w, b) in params["mlp"]:
        x = jnp.maximum(jnp.dot(x, w.T, precision=jax.lax.Precision.HIGHEST) + b, 0.0)
    B = z.shape[0]
    C, H, W = encoder_conv_output_shape
    x = x.reshape(B, C, H, W)
    n = len(deconv_specs)
    for i, (spec, (w, b)) in enumerate(zip(deconv_specs, params["deconv"])):
        Kh, Kw = spec["kernel"]
        Sh, Sw = spec["stride"]
        Ph, Pw = spec["padding"]
        OPh, OPw = spec["output_padding"]
        w_conv = jnp.transpose(w[:, :, ::-1, ::-1], (1, 0, 2, 3))
        y = jax.lax.conv_general_dilated(
            x, w_conv, window_strides=(1, 1),
            padding=[(Kh - 1 - Ph, Kh - 1 - Ph + OPh), (Kw - 1 - Pw, Kw - 1 - Pw + OPw)],
            lhs_dilation=(Sh, Sw),
            dimension_numbers=("NCHW", "OIHW", "NCHW"),
            precision=jax.lax.Precision.HIGHEST)
        y = y + b[None, :, None, None]
        x = jnp.maximum(y, 0.0) if i < n - 1 else jax.nn.sigmoid(y)
    return x


if __name__ == "__main__":
    # Small config consistent with the module:
    #   encoder: Conv2d(1,4,3,2,1) -> Conv2d(4,8,3,2,1) on 16x16 images => (8,4,4)
    #   encoder MLP: (128, 64, 32); latent size 16
    conv_layers_encoder_config = ((1, 4, 3, 2, 1), (4, 8, 3, 2, 1))
    mlp_layers_encoder_config = (128, 64, 32)
    reparam_size = 16
    encoder_conv_output_shape = (8, 4, 4)
    original_image_dims = (16, 16)

    mlp_nodes, deconv_specs = build_decoder_arch(
        conv_layers_encoder_config, mlp_layers_encoder_config, reparam_size,
        encoder_conv_output_shape, original_image_dims)

    root = jax.random.PRNGKey(0)
    k_params, k_z = jax.random.split(root)
    params = init_params(mlp_nodes, deconv_specs, k_params)

    # --- One-time weight preprocessing (hoisted out of the per-call jit). ---
    pmats, pbiases, acts, out_info = prepare_decoder_operands(
        params, deconv_specs, encoder_conv_output_shape,
        weights_dtype=jnp.bfloat16)

    fwd = jax.jit(functools.partial(decoder_forward, acts=acts, out_info=out_info))

    # --- Check 1: batch=2 (padded to the f32 sublane), single grid step. ---
    z = jax.random.normal(k_z, (2, reparam_size), jnp.float32)
    out = jax.block_until_ready(fwd(z, pmats, pbiases))
    assert out.shape == (2, 1, 16, 16), out.shape

    ref = decoder_forward_ref(z, params, deconv_specs, encoder_conv_output_shape)
    max_err = float(jnp.max(jnp.abs(out - ref)))
    # bf16 weights / bf16 MXU inputs with f32 accumulation vs f32-HIGHEST reference.
    assert jnp.allclose(out, ref, atol=2e-2, rtol=2e-2), max_err

    # --- Check 2: exercise the parallel batch grid axis (grid > 1). ---
    z_big = jax.random.normal(jax.random.PRNGKey(1), (20, reparam_size), jnp.float32)
    fwd_tiled = jax.jit(functools.partial(decoder_forward, acts=acts,
                                          out_info=out_info, batch_tile=8))
    out_big = jax.block_until_ready(fwd_tiled(z_big, pmats, pbiases))
    ref_big = decoder_forward_ref(z_big, params, deconv_specs, encoder_conv_output_shape)
    max_err_big = float(jnp.max(jnp.abs(out_big - ref_big)))
    assert out_big.shape == (20, 1, 16, 16), out_big.shape
    assert jnp.allclose(out_big, ref_big, atol=2e-2, rtol=2e-2), max_err_big

    print("KERNEL_OK")
</pallas_src>

<mosaic_0001>
module attributes {stable_mosaic.version = 11 : i64} {
  func.func @_fused_chain_kernel(%arg0: i32, %arg1: memref<8x128xf32, #tpu.memory_space<vmem>>, %arg2: memref<128x128xbf16, #tpu.memory_space<vmem>>, %arg3: memref<1x128xf32, #tpu.memory_space<vmem>>, %arg4: memref<128x128xbf16, #tpu.memory_space<vmem>>, %arg5: memref<1x128xf32, #tpu.memory_space<vmem>>, %arg6: memref<128x128xbf16, #tpu.memory_space<vmem>>, %arg7: memref<1x128xf32, #tpu.memory_space<vmem>>, %arg8: memref<128x256xbf16, #tpu.memory_space<vmem>>, %arg9: memref<1x256xf32, #tpu.memory_space<vmem>>, %arg10: memref<256x256xbf16, #tpu.memory_space<vmem>>, %arg11: memref<1x256xf32, #tpu.memory_space<vmem>>, %arg12: memref<8x256xf32, #tpu.memory_space<vmem>>) attributes {dimension_semantics = [#tpu.dimension_semantics<parallel>], iteration_bounds = array<i64: 1>, scalar_prefetch = 0 : i64, scratch_operands = 0 : i64, tpu.core_type = #tpu.core_type<tc>, window_params = [{transform_indices = @transform_0, window_bounds = array<i64: 8, 128>}, {pipeline_mode = #tpu.pipeline_mode<synchronous>, transform_indices = @transform_1, window_bounds = array<i64: 128, 128>}, {pipeline_mode = #tpu.pipeline_mode<synchronous>, transform_indices = @transform_2, window_bounds = array<i64: 1, 128>}, {pipeline_mode = #tpu.pipeline_mode<synchronous>, transform_indices = @transform_3, window_bounds = array<i64: 128, 128>}, {pipeline_mode = #tpu.pipeline_mode<synchronous>, transform_indices = @transform_4, window_bounds = array<i64: 1, 128>}, {pipeline_mode = #tpu.pipeline_mode<synchronous>, transform_indices = @transform_5, window_bounds = array<i64: 128, 128>}, {pipeline_mode = #tpu.pipeline_mode<synchronous>, transform_indices = @transform_6, window_bounds = array<i64: 1, 128>}, {pipeline_mode = #tpu.pipeline_mode<synchronous>, transform_indices = @transform_7, window_bounds = array<i64: 128, 256>}, {pipeline_mode = #tpu.pipeline_mode<synchronous>, transform_indices = @transform_8, window_bounds = array<i64: 1, 256>}, {pipeline_mode = #tpu.pipeline_mode<synchronous>, transform_indices = @transform_9, window_bounds = array<i64: 256, 256>}, {pipeline_mode = #tpu.pipeline_mode<synchronous>, transform_indices = @transform_10, window_bounds = array<i64: 1, 256>}, {transform_indices = @transform_11, window_bounds = array<i64: 8, 256>}]} {
    %c0 = arith.constant 0 : index
    %c0_0 = arith.constant 0 : index
    %0 = vector.load %arg1[%c0, %c0_0] : memref<8x128xf32, #tpu.memory_space<vmem>>, vector<8x128xf32>
    %c0_1 = arith.constant 0 : index
    %c0_2 = arith.constant 0 : index
    %1 = vector.load %arg2[%c0_1, %c0_2] : memref<128x128xbf16, #tpu.memory_space<vmem>>, vector<128x128xbf16>
    %c0_3 = arith.constant 0 : index
    %c0_4 = arith.constant 0 : index
    %2 = vector.load %arg3[%c0_3, %c0_4] : memref<1x128xf32, #tpu.memory_space<vmem>>, vector<1x128xf32>
    %3 = arith.truncf %0 : vector<8x128xf32> to vector<8x128xbf16>
    %cst = arith.constant dense<0.000000e+00> : vector<8x128xf32>
    %4 = tpu.matmul %3, %1, %cst {dimension_numbers = #tpu.dot_dimension_numbers<[1], [0], [0], [1], [0, 0, 1, 1], [], []>} : vector<8x128xbf16>, vector<128x128xbf16>, vector<8x128xf32> -> vector<8x128xf32>
    %5 = vector.broadcast %2 : vector<1x128xf32> to vector<8x128xf32>
    %6 = arith.addf %4, %5 : vector<8x128xf32>
    %cst_5 = arith.constant 0.000000e+00 : f32
    %7 = vector.broadcast %cst_5 : f32 to vector<8x128xf32>
    %8 = arith.maximumf %6, %7 : vector<8x128xf32>
    %c0_6 = arith.constant 0 : index
    %c0_7 = arith.constant 0 : index
    %9 = vector.load %arg4[%c0_6, %c0_7] : memref<128x128xbf16, #tpu.memory_space<vmem>>, vector<128x128xbf16>
    %c0_8 = arith.constant 0 : index
    %c0_9 = arith.constant 0 : index
    %10 = vector.load %arg5[%c0_8, %c0_9] : memref<1x128xf32, #tpu.memory_space<vmem>>, vector<1x128xf32>
    %11 = arith.truncf %8 : vector<8x128xf32> to vector<8x128xbf16>
    %cst_10 = arith.constant dense<0.000000e+00> : vector<8x128xf32>
    %12 = tpu.matmul %11, %9, %cst_10 {dimension_numbers = #tpu.dot_dimension_numbers<[1], [0], [0], [1], [0, 0, 1, 1], [], []>} : vector<8x128xbf16>, vector<128x128xbf16>, vector<8x128xf32> -> vector<8x128xf32>
    %13 = vector.broadcast %10 : vector<1x128xf32> to vector<8x128xf32>
    %14 = arith.addf %12, %13 : vector<8x128xf32>
    %cst_11 = arith.constant 0.000000e+00 : f32
    %15 = vector.broadcast %cst_11 : f32 to vector<8x128xf32>
    %16 = arith.maximumf %14, %15 : vector<8x128xf32>
    %c0_12 = arith.constant 0 : index
    %c0_13 = arith.constant 0 : index
    %17 = vector.load %arg6[%c0_12, %c0_13] : memref<128x128xbf16, #tpu.memory_space<vmem>>, vector<128x128xbf16>
    %c0_14 = arith.constant 0 : index
    %c0_15 = arith.constant 0 : index
    %18 = vector.load %arg7[%c0_14, %c0_15] : memref<1x128xf32, #tpu.memory_space<vmem>>, vector<1x128xf32>
    %19 = arith.truncf %16 : vector<8x128xf32> to vector<8x128xbf16>
    %cst_16 = arith.constant dense<0.000000e+00> : vector<8x128xf32>
    %20 = tpu.matmul %19, %17, %cst_16 {dimension_numbers = #tpu.dot_dimension_numbers<[1], [0], [0], [1], [0, 0, 1, 1], [], []>} : vector<8x128xbf16>, vector<128x128xbf16>, vector<8x128xf32> -> vector<8x128xf32>
    %21 = vector.broadcast %18 : vector<1x128xf32> to vector<8x128xf32>
    %22 = arith.addf %20, %21 : vector<8x128xf32>
    %cst_17 = arith.constant 0.000000e+00 : f32
    %23 = vector.broadcast %cst_17 : f32 to vector<8x128xf32>
    %24 = arith.maximumf %22, %23 : vector<8x128xf32>
    %c0_18 = arith.constant 0 : index
    %c0_19 = arith.constant 0 : index
    %25 = vector.load %arg8[%c0_18, %c0_19] : memref<128x256xbf16, #tpu.memory_space<vmem>>, vector<128x256xbf16>
    %c0_20 = arith.constant 0 : index
    %c0_21 = arith.constant 0 : index
    %26 = vector.load %arg9[%c0_20, %c0_21] : memref<1x256xf32, #tpu.memory_space<vmem>>, vector<1x256xf32>
    %27 = arith.truncf %24 : vector<8x128xf32> to vector<8x128xbf16>
    %cst_22 = arith.constant dense<0.000000e+00> : vector<8x256xf32>
    %28 = tpu.matmul %27, %25, %cst_22 {dimension_numbers = #tpu.dot_dimension_numbers<[1], [0], [0], [1], [0, 0, 1, 1], [], []>} : vector<8x128xbf16>, vector<128x256xbf16>, vector<8x256xf32> -> vector<8x256xf32>
    %29 = vector.broadcast %26 : vector<1x256xf32> to vector<8x256xf32>
    %30 = arith.addf %28, %29 : vector<8x256xf32>
    %cst_23 = arith.constant 0.000000e+00 : f32
    %31 = vector.broadcast %cst_23 : f32 to vector<8x256xf32>
    %32 = arith.maximumf %30, %31 : vector<8x256xf32>
    %c0_24 = arith.constant 0 : index
    %c0_25 = arith.constant 0 : index
    %33 = vector.load %arg10[%c0_24, %c0_25] : memref<256x256xbf16, #tpu.memory_space<vmem>>, vector<256x256xbf16>
    %c0_26 = arith.constant 0 : index
    %c0_27 = arith.constant 0 : index
    %34 = vector.load %arg11[%c0_26, %c0_27] : memref<1x256xf32, #tpu.memory_space<vmem>>, vector<1x256xf32>
    %35 = arith.truncf %32 : vector<8x256xf32> to vector<8x256xbf16>
    %cst_28 = arith.constant dense<0.000000e+00> : vector<8x256xf32>
    %36 = tpu.matmul %35, %33, %cst_28 {dimension_numbers = #tpu.dot_dimension_numbers<[1], [0], [0], [1], [0, 0, 1, 1], [], []>} : vector<8x256xbf16>, vector<256x256xbf16>, vector<8x256xf32> -> vector<8x256xf32>
    %37 = vector.broadcast %34 : vector<1x256xf32> to vector<8x256xf32>
    %38 = arith.addf %36, %37 : vector<8x256xf32>
    %39 = math.absf %38 : vector<8x256xf32>
    %cst_29 = arith.constant 0.000000e+00 : f32
    %40 = vector.broadcast %cst_29 : f32 to vector<8x256xf32>
    %41 = arith.subf %40, %39 : vector<8x256xf32>
    %42 = math.exp %41 : vector<8x256xf32>
    %cst_30 = arith.constant 0.000000e+00 : f32
    %43 = vector.broadcast %cst_30 : f32 to vector<8x256xf32>
    %44 = arith.cmpf oge, %38, %43 : vector<8x256xf32>
    %cst_31 = arith.constant 1.000000e+00 : f32
    %45 = vector.broadcast %cst_31 : f32 to vector<8x256xf32>
    %46 = arith.addf %45, %42 : vector<8x256xf32>
    %cst_32 = arith.constant 1.000000e+00 : f32
    %47 = vector.broadcast %cst_32 : f32 to vector<8x256xf32>
    %48 = arith.divf %47, %46 : vector<8x256xf32>
    %cst_33 = arith.constant 1.000000e+00 : f32
    %49 = vector.broadcast %cst_33 : f32 to vector<8x256xf32>
    %50 = arith.addf %49, %42 : vector<8x256xf32>
    %51 = arith.divf %42, %50 : vector<8x256xf32>
    %52 = arith.select %44, %48, %51 : vector<8x256xi1>, vector<8x256xf32>
    %c0_34 = arith.constant 0 : index
    %c0_35 = arith.constant 0 : index
    %53 = vector.load %arg12[%c0_34, %c0_35] : memref<8x256xf32, #tpu.memory_space<vmem>>, vector<8x256xf32>
    tpu.vector_store %arg12[%c0_34, %c0_35], %52 {strides = array<i32>} : memref<8x256xf32, #tpu.memory_space<vmem>>, vector<8x256xf32>,
    return
  }
  func.func @transform_0(%arg0: i32) -> (i32, i32) {
    %c0_i32 = arith.constant 0 : i32
    %c0_i32_0 = arith.constant 0 : i32
    return %arg0, %c0_i32 : i32, i32
  }
  func.func @transform_1(%arg0: i32) -> (i32, i32) {
    %c0_i32 = arith.constant 0 : i32
    %c0_i32_0 = arith.constant 0 : i32
    %c0_i32_1 = arith.constant 0 : i32
    return %c0_i32, %c0_i32_0 : i32, i32
  }
  func.func @transform_2(%arg0: i32) -> (i32, i32) {
    %c0_i32 = arith.constant 0 : i32
    %c0_i32_0 = arith.constant 0 : i32
    %c0_i32_1 = arith.constant 0 : i32
    return %c0_i32, %c0_i32_0 : i32, i32
  }
  func.func @transform_3(%arg0: i32) -> (i32, i32) {
    %c0_i32 = arith.constant 0 : i32
    %c0_i32_0 = arith.constant 0 : i32
    %c0_i32_1 = arith.constant 0 : i32
    return %c0_i32, %c0_i32_0 : i32, i32
  }
  func.func @transform_4(%arg0: i32) -> (i32, i32) {
    %c0_i32 = arith.constant 0 : i32
    %c0_i32_0 = arith.constant 0 : i32
    %c0_i32_1 = arith.constant 0 : i32
    return %c0_i32, %c0_i32_0 : i32, i32
  }
  func.func @transform_5(%arg0: i32) -> (i32, i32) {
    %c0_i32 = arith.constant 0 : i32
    %c0_i32_0 = arith.constant 0 : i32
    %c0_i32_1 = arith.constant 0 : i32
    return %c0_i32, %c0_i32_0 : i32, i32
  }
  func.func @transform_6(%arg0: i32) -> (i32, i32) {
    %c0_i32 = arith.constant 0 : i32
    %c0_i32_0 = arith.constant 0 : i32
    %c0_i32_1 = arith.constant 0 : i32
    return %c0_i32, %c0_i32_0 : i32, i32
  }
  func.func @transform_7(%arg0: i32) -> (i32, i32) {
    %c0_i32 = arith.constant 0 : i32
    %c0_i32_0 = arith.constant 0 : i32
    %c0_i32_1 = arith.constant 0 : i32
    return %c0_i32, %c0_i32_0 : i32, i32
  }
  func.func @transform_8(%arg0: i32) -> (i32, i32) {
    %c0_i32 = arith.constant 0 : i32
    %c0_i32_0 = arith.constant 0 : i32
    %c0_i32_1 = arith.constant 0 : i32
    return %c0_i32, %c0_i32_0 : i32, i32
  }
  func.func @transform_9(%arg0: i32) -> (i32, i32) {
    %c0_i32 = arith.constant 0 : i32
    %c0_i32_0 = arith.constant 0 : i32
    %c0_i32_1 = arith.constant 0 : i32
    return %c0_i32, %c0_i32_0 : i32, i32
  }
  func.func @transform_10(%arg0: i32) -> (i32, i32) {
    %c0_i32 = arith.constant 0 : i32
    %c0_i32_0 = arith.constant 0 : i32
    %c0_i32_1 = arith.constant 0 : i32
    return %c0_i32, %c0_i32_0 : i32, i32
  }
  func.func @transform_11(%arg0: i32) -> (i32, i32) {
    %c0_i32 = arith.constant 0 : i32
    %c0_i32_0 = arith.constant 0 : i32
    return %arg0, %c0_i32 : i32, i32
  }
}

</mosaic_0001>

<bundles_post_ra>
// kernel: decoder_forward.1
= control target key start
LH: loop header
LB: loop body
LE: loop exit
PB: predicated region body
PF: predicated region fallthrough
CT: control target
= control target key end

     0   :  { %16 = vsyncpa [#allocation3], 0  ;;  %s1484_s0 = inlined_call_operand.vmem [shape: f32[8,128], index: 0, kind: input, shape index: {}]   ;;  %s1485_s1 = inlined_call_operand.hbm [shape: bf16[128,128], index: 1, kind: input, shape index: {}]   ;;  %s1486_s2 = inlined_call_operand.vmem [shape: f32[1,128], index: 2, kind: input, shape index: {}]   ;;  %s1487_s3 = inlined_call_operand.hbm [shape: bf16[128,128], index: 3, kind: input, shape index: {}]   ;;  %s1488_s4 = inlined_call_operand.vmem [shape: f32[1,128], index: 4, kind: input, shape index: {}]   ;;  %s1489_s5 = inlined_call_operand.hbm [shape: bf16[128,128], index: 5, kind: input, shape index: {}]   ;;  %s1490_s6 = inlined_call_operand.vmem [shape: f32[1,128], index: 6, kind: input, shape index: {}]   ;;  %s1491_s7 = inlined_call_operand.hbm [shape: bf16[128,256], index: 7, kind: input, shape index: {}]   ;;  %s1492_s8 = inlined_call_operand.vmem [shape: f32[1,256], index: 8, kind: input, shape index: {}]   ;;  %s1493_s9 = inlined_call_operand.hbm [shape: bf16[256,256], index: 9, kind: input, shape index: {}]   ;;  %s1494_s10 = inlined_call_operand.vmem [shape: f32[1,256], index: 10, kind: input, shape index: {}]   ;;  %s1495_s11 = inlined_call_operand.vmem [shape: f32[8,256], index: 11, kind: output, shape index: {}]  }
   0x1   :  { %17 = vsyncpa [#allocation5], 0 }
   0x2   :  { %18 = vsyncpa [#allocation8], 0  ;;  %s1269_s17 = smov [#allocation4]   ;;  %s1270_s19 = smov [#allocation7]  }
   0x3   :  { %s40_s18 = sshll.u32 %s1269_s17, 4  ;;  %s68_s20 = sshll.u32 %s1270_s19, 4  ;;  %s41_s18 = int_to_ptr.vmem [resolvable:$true] %s40_s18  ;;  %s1341_s20 = int_to_ptr.vmem [resolvable:$true] %s68_s20 }
   0x4   :  { %s1153_s23 = scalar_lea.hbm %s1487_s3, 1024 }
   0x5   :  { %p1154_p0 = scmp.ne.s32.totalorder %s1487_s3, %s1153_s23  ;;  %p1157_p1 = scmp.lt.u32.totalorder %s1153_s23, %s1487_s3 }
   0x7   :  { %p1159_p2 = pnand %p1157_p1, %p1154_p0 }
   0x9   :  { %1162 = shalt.err (!%p1159_p2)
}
   0xa   :  { %s1163_s28 = scalar_lea.vmem %s41_s18, 1024  ;;  %p1168_p4 = scmp.lt.s32.totalorder %s41_s18, %s41_s18 }
   0xb   :  { %p1164_p3 = scmp.ne.s32.totalorder %s41_s18, %s1163_s28  ;;  %p1169_p5 = scmp.lt.s32.totalorder %s1163_s28, %s1163_s28 }
   0xd   :  { %p1170_p6 = por %p1169_p5, %p1168_p4 }
   0xf   :  { %p1171_p7 = pnand %p1170_p6, %p1164_p3 }
  0x11   :  { %1174 = shalt.err (!%p1171_p7)
}
  0x12   :  { %s1271_s29 = smov 64   ;;  %s1272_s30 = smov 4  }
  0x13   :  { %46 = dma.hbm_to_vmem [thread:$0]  %s1487_s3, 1024, %s41_s18, [#allocation5], %s1271_s29, %s1271_s29, %s1272_s30  }
  0x14   :  { %s1175_s16 = scalar_lea.hbm %s1491_s7, 2048 }
  0x15   :  { %p1176_p8 = scmp.ne.s32.totalorder %s1491_s7, %s1175_s16  ;;  %p1179_p9 = scmp.lt.u32.totalorder %s1175_s16, %s1491_s7 }
  0x17   :  { %p1181_p10 = pnand %p1179_p9, %p1176_p8 }
  0x19   :  { %1184 = shalt.err (!%p1181_p10)
}
  0x1a   :  { %s1185_s23 = scalar_lea.vmem %s1341_s20, 2048  ;;  %p1190_p12 = scmp.lt.s32.totalorder %s1341_s20, %s1341_s20 }
  0x1b   :  { %p1186_p11 = scmp.ne.s32.totalorder %s1341_s20, %s1185_s23  ;;  %p1191_p13 = scmp.lt.s32.totalorder %s1185_s23, %s1185_s23 }
  0x1d   :  { %p1192_p0 = por %p1191_p13, %p1190_p12 }
  0x1f   :  { %p1193_p1 = pnand %p1192_p0, %p1186_p11 }
  0x21   :  { %1196 = shalt.err (!%p1193_p1)
}
  0x22   :  { %s1273_s3 = smov 128   ;;  %s1274_s18 = smov 8  }
  0x23   :  { %74 = dma.hbm_to_vmem [thread:$0]  %s1491_s7, 2048, %s1341_s20, [#allocation8], %s1273_s3, %s1273_s3, %s1274_s18  }
  0x24   :  { %s1275_s26 = smov [#allocation2]   ;;  %s1276_s28 = smov [#allocation6]  }
  0x25   :  { %s26_s27 = sshll.u32 %s1275_s26, 4  ;;  %s54_s12 = sshll.u32 %s1276_s28, 4  ;;  %s27_s27 = int_to_ptr.vmem [resolvable:$true] %s26_s27  ;;  %s1378_s12 = int_to_ptr.vmem [resolvable:$true] %s54_s12 }
  0x26   :  { %s1197_s15 = scalar_lea.hbm %s1485_s1, 1024 }
  0x27   :  { %p1198_p2 = scmp.ne.s32.totalorder %s1485_s1, %s1197_s15  ;;  %p1201_p3 = scmp.lt.u32.totalorder %s1197_s15, %s1485_s1 }
  0x29   :  { %p1203_p4 = pnand %p1201_p3, %p1198_p2 }
  0x2b   :  { %1206 = shalt.err (!%p1203_p4)
}
  0x2c   :  { %s1207_s7 = scalar_lea.vmem %s27_s27, 1024  ;;  %p1212_p6 = scmp.lt.s32.totalorder %s27_s27, %s27_s27 }
  0x2d   :  { %p1208_p5 = scmp.ne.s32.totalorder %s27_s27, %s1207_s7  ;;  %p1213_p7 = scmp.lt.s32.totalorder %s1207_s7, %s1207_s7 }
  0x2f   :  { %p1214_p8 = por %p1213_p7, %p1212_p6 }
  0x31   :  { %p1215_p9 = pnand %p1214_p8, %p1208_p5 }
  0x33   :  { %1218 = shalt.err (!%p1215_p9)
}
  0x34   :  { %32 = dma.hbm_to_vmem [thread:$0]  %s1485_s1, 1024, %s27_s27, [#allocation3], %s1271_s29, %s1271_s29, %s1272_s30  }
  0x35   :  { %s1219_s25 = scalar_lea.hbm %s1489_s5, 1024 }
  0x36   :  { %p1220_p10 = scmp.ne.s32.totalorder %s1489_s5, %s1219_s25  ;;  %p1223_p11 = scmp.lt.u32.totalorder %s1219_s25, %s1489_s5 }
  0x38   :  { %p1225_p12 = pnand %p1223_p11, %p1220_p10 }
  0x3a   :  { %1228 = shalt.err (!%p1225_p12)
}
  0x3b   :  { %s1229_s15 = scalar_lea.vmem %s1378_s12, 1024  ;;  %p1234_p0 = scmp.lt.s32.totalorder %s1378_s12, %s1378_s12 }
  0x3c   :  { %p1230_p13 = scmp.ne.s32.totalorder %s1378_s12, %s1229_s15  ;;  %p1235_p1 = scmp.lt.s32.totalorder %s1229_s15, %s1229_s15 }
  0x3e   :  { %p1236_p2 = por %p1235_p1, %p1234_p0 }
  0x40   :  { %p1237_p3 = pnand %p1236_p2, %p1230_p13 }
  0x42   :  { %1240 = shalt.err (!%p1237_p3)
}
  0x43   :  { %60 = dma.hbm_to_vmem [thread:$0]  %s1489_s5, 1024, %s1378_s12, [#allocation5], %s1271_s29, %s1271_s29, %s1272_s30  }
  0x44   :  { %s1277_s16 = smov [#allocation9]   ;;  %s1241_s7 = scalar_lea.hbm %s1493_s9, 4096 }
  0x45   :  { %s82_s17 = sshll.u32 %s1277_s16, 4  ;;  %p1242_p4 = scmp.ne.s32.totalorder %s1493_s9, %s1241_s7  ;;  %s83_s17 = int_to_ptr.vmem [resolvable:$true] %s82_s17 }
  0x46   :  { %p1245_p5 = scmp.lt.u32.totalorder %s1241_s7, %s1493_s9 }
  0x48   :  { %p1247_p6 = pnand %p1245_p5, %p1242_p4 }
  0x4a   :  { %1250 = shalt.err (!%p1247_p6)
}
  0x4b   :  { %s1251_s25 = scalar_lea.vmem %s83_s17, 4096  ;;  %p1256_p8 = scmp.lt.s32.totalorder %s83_s17, %s83_s17 }
  0x4c   :  { %p1252_p7 = scmp.ne.s32.totalorder %s83_s17, %s1251_s25  ;;  %p1257_p9 = scmp.lt.s32.totalorder %s1251_s25, %s1251_s25 }
  0x4e   :  { %p1258_p10 = por %p1257_p9, %p1256_p8 }
  0x50   :  { %p1259_p11 = pnand %p1258_p10, %p1252_p7 }
  0x52   :  { %1262 = shalt.err (!%p1259_p11)
}
  0x53   :  { %88 = dma.hbm_to_vmem [thread:$0]  %s1493_s9, 4096, %s83_s17, [#allocation8], %s1273_s3, %s1273_s3, %s1274_s18  }
  0x54   :  { %1263 = dma.done.wait [#allocation3], 1024  }
  0x55   :  { %1264 = vsyncadd [#allocation3], 4294966272 }
  0x56   :  { %1265 = dma.done.wait [#allocation5], 2048  }
  0x57   :  { %1266 = vsyncadd [#allocation5], 4294965248 }
  0x58   :  { %1267 = dma.done.wait [#allocation8], 6144  }
  0x59   :  { %1268 = vsyncadd [#allocation8], 4294961152  ;;  %v1278_v0 = vmov 0.0   ;;  %vm1279_vm0 = vmmov 0   ;;  %v1049_v1 = vld [vmem:[#allocation2] sm:$0xff]   ;;  %v1050_v2 = vld [vmem:[#allocation2 + $0x8] sm:$0xff]  }
  0x5a   :  { %977 = vmatprep.subr.bf16.mxu1 %v1278_v0  ;;  %993 = vmatprep.mubr.msk.bf16.mxu1 %vm1279_vm0, %v1278_v0  ;;  %v1051_v3 = vld [vmem:[#allocation2 + $0x10] sm:$0xff]   ;;  %v1052_v4 = vld [vmem:[#allocation2 + $0x18] sm:$0xff]   ;;  %v1053_v5 = vld [vmem:[#allocation2 + $0x20] sm:$0xff]   ;;  %v1280_v59 = vmov 0  }
  0x5b   :  { %1017 = vmatprep.subr.bf16.mxu0 %v1278_v0  ;;  %1033 = vmatprep.mubr.msk.bf16.mxu0 %vm1279_vm0, %v1278_v0  ;;  %v1054_v6 = vld [vmem:[#allocation2 + $0x28] sm:$0xff]   ;;  %v1055_v7 = vld [vmem:[#allocation2 + $0x30] sm:$0xff]   ;;  %v1056_v8 = vld [vmem:[#allocation2 + $0x38] sm:$0xff]  }
  0x5c   :  { %978 = vmatpush3.bf16.msra.mxu1 %v1049_v1  ;;  %v107_v9 = vld [vmem:[%s1484_s0] sm:$0xff]  ;;  %v1058_v12 = vld [vmem:[#allocation4 + $0x8] sm:$0xff]   ;;  %v1059_v13 = vld [vmem:[#allocation4 + $0x10] sm:$0xff]  }
  0x5d   :  { %979 = vmatprep.subr.bf16.mxu1 %v1278_v0  ;;  %v1057_v10 = vld [vmem:[#allocation4] sm:$0xff]   ;;  %v125_v11 = vpack.c.bf16 %v107_v9, %v107_v9  ;;  %v1060_v14 = vld [vmem:[#allocation4 + $0x18] sm:$0xff]   ;;  %v1062_v16 = vld [vmem:[#allocation4 + $0x28] sm:$0xff]  }
  0x5e   :  { %v1061_v15 = vld [vmem:[#allocation4 + $0x20] sm:$0xff]   ;;  %v1063_v17 = vld [vmem:[#allocation4 + $0x30] sm:$0xff]   ;;  %v1064_v18 = vld [vmem:[#allocation4 + $0x38] sm:$0xff]  }
  0x5f   :  { %v1065_v19 = vld [vmem:[#allocation6] sm:$0xff]   ;;  %v1066_v20 = vld [vmem:[#allocation6 + $0x8] sm:$0xff]   ;;  %v1067_v21 = vld [vmem:[#allocation6 + $0x10] sm:$0xff]  }
  0x60   :  { %980 = vmatpush3.bf16.msra.mxu1 %v1050_v2  ;;  %1018 = vmatpush3.bf16.msra.mxu0 %v1065_v19  ;;  %v1068_v22 = vld [vmem:[#allocation6 + $0x18] sm:$0xff]   ;;  %v1069_v23 = vld [vmem:[#allocation6 + $0x20] sm:$0xff]   ;;  %v1070_v24 = vld [vmem:[#allocation6 + $0x28] sm:$0xff]  }
  0x61   :  { %981 = vmatprep.subr.bf16.mxu1 %v1278_v0  ;;  %1019 = vmatprep.subr.bf16.mxu0 %v1278_v0  ;;  %v875_v25 = vld [vmem:[%s1486_s2] ss:$0 sm:$0xff]  ;;  %v1071_v33 = vld [vmem:[#allocation6 + $0x30] sm:$0xff]   ;;  %v1072_v34 = vld [vmem:[#allocation6 + $0x38] sm:$0xff]  }
  0x62   :  { %v1073_v35 = vld [vmem:[#allocation7] ss:$8 sps:$4 sm:$0xff]   ;;  %v1075_v36 = vld [vmem:[#allocation7 + $0x4] ss:$8 sps:$4 sm:$0xff]   ;;  %v1078_v37 = vld [vmem:[#allocation7 + $0x14] ss:$8 sps:$4 sm:$0xff]  }
  0x63   :  { %v1076_v38 = vld [vmem:[#allocation7 + $0x10] ss:$8 sps:$4 sm:$0xff]   ;;  %v1081_v39 = vld [vmem:[#allocation7 + $0x24] ss:$8 sps:$4 sm:$0xff]   ;;  %v1079_v40 = vld [vmem:[#allocation7 + $0x20] ss:$8 sps:$4 sm:$0xff]  }
  0x64   :  { %982 = vmatpush3.bf16.msra.mxu1 %v1051_v3  ;;  %1020 = vmatpush3.bf16.msra.mxu0 %v1066_v20  ;;  %v1084_v41 = vld [vmem:[#allocation7 + $0x34] ss:$8 sps:$4 sm:$0xff]   ;;  %v1082_v42 = vld [vmem:[#allocation7 + $0x30] ss:$8 sps:$4 sm:$0xff]   ;;  %v1087_v43 = vld [vmem:[#allocation7 + $0x44] ss:$8 sps:$4 sm:$0xff]  }
  0x65   :  { %983 = vmatprep.subr.bf16.mxu1 %v1278_v0  ;;  %1021 = vmatprep.subr.bf16.mxu0 %v1278_v0  ;;  %v1085_v44 = vld [vmem:[#allocation7 + $0x40] ss:$8 sps:$4 sm:$0xff]   ;;  %v1090_v45 = vld [vmem:[#allocation7 + $0x54] ss:$8 sps:$4 sm:$0xff]   ;;  %v1088_v46 = vld [vmem:[#allocation7 + $0x50] ss:$8 sps:$4 sm:$0xff]  }
  0x66   :  { %v1093_v47 = vld [vmem:[#allocation7 + $0x64] ss:$8 sps:$4 sm:$0xff]   ;;  %v1091_v48 = vld [vmem:[#allocation7 + $0x60] ss:$8 sps:$4 sm:$0xff]   ;;  %v1096_v57 = vld [vmem:[#allocation7 + $0x74] ss:$8 sps:$4 sm:$0xff]  }
  0x67   :  { %v884_v49 = vld [vmem:[%s1488_s4] ss:$0 sm:$0xff]  ;;  %v1094_v58 = vld [vmem:[#allocation7 + $0x70] ss:$8 sps:$4 sm:$0xff]   ;;  %v1099_v61 = vld [vmem:[#allocation9 + $0x4] ss:$8 sps:$4 sm:$0xff]  }
  0x68   :  { %984 = vmatpush3.bf16.msra.mxu1 %v1052_v4  ;;  %1022 = vmatpush3.bf16.msra.mxu0 %v1067_v21  ;;  %v1097_v60 = vld [vmem:[#allocation9] ss:$8 sps:$4 sm:$0xff]   ;;  %v1102_v62 = vld [vmem:[#allocation9 + $0x14] ss:$8 sps:$4 sm:$0xff]   ;;  %v1100_v63 = vld [vmem:[#allocation9 + $0x10] ss:$8 sps:$4 sm:$0xff]  }
  0x69   :  { %985 = vmatprep.subr.bf16.mxu1 %v1278_v0  ;;  %1023 = vmatprep.subr.bf16.mxu0 %v1278_v0  ;;  %v1103_v1 = vld [vmem:[#allocation9 + $0x20] ss:$8 sps:$4 sm:$0xff]   ;;  %v1108_v2 = vld [vmem:[#allocation9 + $0x34] ss:$8 sps:$4 sm:$0xff]   ;;  %v1106_v3 = vld [vmem:[#allocation9 + $0x30] ss:$8 sps:$4 sm:$0xff]  }
  0x6a   :  { %v1111_v4 = vld [vmem:[#allocation9 + $0x44] ss:$8 sps:$4 sm:$0xff]   ;;  %v1115_v9 = vld [vmem:[#allocation9 + $0x60] ss:$8 sps:$4 sm:$0xff]   ;;  %v1130_v19 = vld [vmem:[#allocation9 + $0xb0] ss:$8 sps:$4 sm:$0xff]  }
  0x6b   :  { %v1135_v20 = vld [vmem:[#allocation9 + $0xc4] ss:$8 sps:$4 sm:$0xff]   ;;  %v1133_v21 = vld [vmem:[#allocation9 + $0xc0] ss:$8 sps:$4 sm:$0xff]  }
  0x6c   :  { %986 = vmatpush3.bf16.msra.mxu1 %v1053_v5  ;;  %1024 = vmatpush3.bf16.msra.mxu0 %v1068_v22  ;;  %v1109_v5 = vld [vmem:[#allocation9 + $0x40] ss:$8 sps:$4 sm:$0xff]   ;;  %v1138_v22 = vld [vmem:[#allocation9 + $0xd4] ss:$8 sps:$4 sm:$0xff]  }
  0x6d   :  { %987 = vmatprep.subr.bf16.mxu1 %v1278_v0  ;;  %1025 = vmatprep.subr.bf16.mxu0 %v1278_v0 }
  0x70   :  { %988 = vmatpush3.bf16.msra.mxu1 %v1054_v6  ;;  %1026 = vmatpush3.bf16.msra.mxu0 %v1069_v23  ;;  %v1114_v6 = vld [vmem:[#allocation9 + $0x54] ss:$8 sps:$4 sm:$0xff]   ;;  %v1136_v23 = vld [vmem:[#allocation9 + $0xd0] ss:$8 sps:$4 sm:$0xff]  }
  0x71   :  { %989 = vmatprep.subr.bf16.mxu1 %v1278_v0  ;;  %1027 = vmatprep.subr.bf16.mxu0 %v1278_v0 }
  0x74   :  { %990 = vmatpush3.bf16.msra.mxu1 %v1055_v7  ;;  %1028 = vmatpush3.bf16.msra.mxu0 %v1070_v24  ;;  %v1112_v7 = vld [vmem:[#allocation9 + $0x50] ss:$8 sps:$4 sm:$0xff]   ;;  %v893_v24 = vld [vmem:[%s1490_s6] ss:$0 sm:$0xff] }
  0x75   :  { %991 = vmatprep.subr.bf16.mxu1 %v1278_v0  ;;  %1029 = vmatprep.subr.bf16.mxu0 %v1278_v0 }
  0x78   :  { %992 = vmatpush3.bf16.msra.mxu1 %v1056_v8  ;;  %1030 = vmatpush3.bf16.msra.mxu0 %v1071_v33  ;;  %v1117_v8 = vld [vmem:[#allocation9 + $0x64] ss:$8 sps:$4 sm:$0xff]   ;;  %v1139_v33 = vld [vmem:[#allocation9 + $0xe0] ss:$8 sps:$4 sm:$0xff]  }
  0x79   :  { %997 = vmatprep.subr.bf16.mxu1 %v1278_v0  ;;  %1031 = vmatprep.subr.bf16.mxu0 %v1278_v0 }
  0x7b   :  { %994 = vmatmul.mubr.bf16.vlgmr.msra.gmra.mrb[0].mxu1 %v125_v11  ;;  %v1118_v11 = vld [vmem:[#allocation9 + $0x70] ss:$8 sps:$4 sm:$0xff]  }
  0x7c   :  { %998 = vmatpush3.bf16.msra.mxu1 %v1057_v10  ;;  %1013 = vmatprep.mubr.msk.bf16.mxu1 %vm1279_vm0, %v1278_v0  ;;  %v1120_v10 = vld [vmem:[#allocation9 + $0x74] ss:$8 sps:$4 sm:$0xff]  }
  0x7d   :  { %999 = vmatprep.subr.bf16.mxu1 %v1278_v0  ;;  %1032 = vmatpush3.bf16.msra.mxu0 %v1072_v34  ;;  %v1144_v34 = vld [vmem:[#allocation9 + $0xf4] ss:$8 sps:$4 sm:$0xff]  }
  0x7e   :  { %805 = vmatprep.subr.bf16.mxu0 %v1099_v61 }
  0x80   :  { %1000 = vmatpush3.bf16.msra.mxu1 %v1058_v12  ;;  %v1123_v12 = vld [vmem:[#allocation9 + $0x84] ss:$8 sps:$4 sm:$0xff]  }
  0x81   :  { %1001 = vmatprep.subr.bf16.mxu1 %v1278_v0 }
  0x84   :  { %1002 = vmatpush3.bf16.msra.mxu1 %v1059_v13  ;;  %v1121_v13 = vld [vmem:[#allocation9 + $0x80] ss:$8 sps:$4 sm:$0xff]  }
  0x85   :  { %1003 = vmatprep.subr.bf16.mxu1 %v1278_v0 }
  0x88   :  { %1004 = vmatpush3.bf16.msra.mxu1 %v1060_v14  ;;  %v1126_v14 = vld [vmem:[#allocation9 + $0x94] ss:$8 sps:$4 sm:$0xff]  }
  0x89   :  { %1005 = vmatprep.subr.bf16.mxu1 %v1278_v0 }
  0x8c   :  { %1006 = vmatpush3.bf16.msra.mxu1 %v1061_v15  ;;  %v1124_v15 = vld [vmem:[#allocation9 + $0x90] ss:$8 sps:$4 sm:$0xff]  }
  0x8d   :  { %1007 = vmatprep.subr.bf16.mxu1 %v1278_v0 }
  0x90   :  { %1008 = vmatpush3.bf16.msra.mxu1 %v1062_v16  ;;  %v1129_v16 = vld [vmem:[#allocation9 + $0xa4] ss:$8 sps:$4 sm:$0xff]  }
  0x91   :  { %1009 = vmatprep.subr.bf16.mxu1 %v1278_v0 }
  0x94   :  { %1010 = vmatpush3.bf16.msra.mxu1 %v1063_v17  ;;  %v1127_v17 = vld [vmem:[#allocation9 + $0xa0] ss:$8 sps:$4 sm:$0xff]  }
  0x95   :  { %1011 = vmatprep.subr.bf16.mxu1 %v1278_v0  ;;  %v1105_v0 = vld [vmem:[#allocation9 + $0x24] ss:$8 sps:$4 sm:$0xff]  }
  0x98   :  { %1012 = vmatpush3.bf16.msra.mxu1 %v1064_v18  ;;  %v1132_v18 = vld [vmem:[#allocation9 + $0xb4] ss:$8 sps:$4 sm:$0xff]  }
  0x99   :  { %556 = vmatprep.subr.bf16.mxu1 %v1075_v36  ;;  %v466_v36 = vlaneseq }
 0x14e   :  { %v214_v26 = vpop.f32.mrb[0].mxu1 }
 0x14f   :  { %v215_v27 = vadd.f32 %v875_v25, %v214_v26  ;;  %v995_v28 = vpop.f32.mrb[1].mxu1 }
 0x150   :  { %v217_v29 = vpop.f32.mrb[2].mxu1 }
 0x151   :  { %v220_v30 = vmax.f32 %v215_v27, 0.0  ;;  %v996_v31 = vpop.f32.mrb[3].mxu1 }
 0x153   :  { %v238_v32 = vpack.c.bf16 %v220_v30, %v220_v30 }
 0x155   :  { %1014 = vmatmul.mubr.bf16.vlgmr.msra.gmra.mrb[4].mxu1 %v238_v32  ;;  %v1141_v32 = vld [vmem:[#allocation9 + $0xe4] ss:$8 sps:$4 sm:$0xff]  }
 0x156   :  { %557 = vmatpush1.bf16.msra.mxu1 %v1073_v35  ;;  %588 = vmatprep.mubr.bf16.mxu1 %v1280_v59  ;;  %v1142_v35 = vld [vmem:[#allocation9 + $0xf0] ss:$8 sps:$4 sm:$0xff]  }
 0x157   :  { %558 = vmatprep.subr.bf16.mxu1 %v1078_v37  ;;  %v467_v37 = vshrl.u32 %v466_v36, 7 }
 0x15a   :  { %559 = vmatpush1.bf16.msra.mxu1 %v1076_v38  ;;  %v468_v38 = vsub.s32 0, %v467_v37 }
 0x15b   :  { %560 = vmatprep.subr.bf16.mxu1 %v1081_v39  ;;  %v463_v39 = vld [vmem:[%s1492_s8] sm:$0x3] }
 0x15e   :  { %561 = vmatpush1.bf16.msra.mxu1 %v1079_v40  ;;  %v472_v40 = vsub.s32 1, %v467_v37 }
 0x15f   :  { %562 = vmatprep.subr.bf16.mxu1 %v1084_v41  ;;  %v469_v41 = vrot.slane %v463_v39, %v468_v38 }
 0x162   :  { %563 = vmatpush1.bf16.msra.mxu1 %v1082_v42  ;;  %v473_v42 = vrot.slane %v463_v39, %v472_v40 }
 0x163   :  { %564 = vmatprep.subr.bf16.mxu1 %v1087_v43 }
 0x166   :  { %565 = vmatpush1.bf16.msra.mxu1 %v1085_v44 }
 0x167   :  { %566 = vmatprep.subr.bf16.mxu1 %v1090_v45 }
 0x16a   :  { %567 = vmatpush1.bf16.msra.mxu1 %v1088_v46 }
 0x16b   :  { %568 = vmatprep.subr.bf16.mxu1 %v1093_v47 }
 0x16e   :  { %569 = vmatpush1.bf16.msra.mxu1 %v1091_v48 }
 0x16f   :  { %570 = vmatprep.subr.bf16.mxu1 %v1096_v57 }
 0x172   :  { %571 = vmatpush1.bf16.msra.mxu1 %v1094_v58 }
 0x228   :  { %v327_v50 = vpop.f32.mrb[4].mxu1 }
 0x229   :  { %v328_v51 = vadd.f32 %v884_v49, %v327_v50  ;;  %v1015_v52 = vpop.f32.mrb[5].mxu1 }
 0x22a   :  { %v330_v53 = vpop.f32.mrb[6].mxu1 }
 0x22b   :  { %v333_v54 = vmax.f32 %v328_v51, 0.0  ;;  %v1016_v55 = vpop.f32.mrb[7].mxu1  ;;  %v631_v53 = vld [vmem:[%s1494_s10] sm:$0x3] }
 0x22c   :  { %v642_v55 = vrot.slane %v631_v53, %v472_v40 }
 0x22d   :  { %v351_v56 = vpack.c.bf16 %v333_v54, %v333_v54  ;;  %v638_v54 = vrot.slane %v631_v53, %v468_v38 }
 0x22f   :  { %1034 = vmatmul.mubr.bf16.vlgmr.msra.gmra.mrb[0].mxu0 %v351_v56 }
 0x230   :  { %806 = vmatpush1.bf16.msra.mxu0 %v1097_v60 }
 0x231   :  { %807 = vmatprep.subr.bf16.mxu0 %v1102_v62 }
 0x234   :  { %808 = vmatpush1.bf16.msra.mxu0 %v1100_v63 }
 0x235   :  { %809 = vmatprep.subr.bf16.mxu0 %v1105_v0 }
 0x238   :  { %810 = vmatpush1.bf16.msra.mxu0 %v1103_v1 }
 0x239   :  { %811 = vmatprep.subr.bf16.mxu0 %v1108_v2 }
 0x23c   :  { %812 = vmatpush1.bf16.msra.mxu0 %v1106_v3 }
 0x23d   :  { %813 = vmatprep.subr.bf16.mxu0 %v1111_v4 }
 0x240   :  { %814 = vmatpush1.bf16.msra.mxu0 %v1109_v5 }
 0x241   :  { %815 = vmatprep.subr.bf16.mxu0 %v1114_v6 }
 0x244   :  { %816 = vmatpush1.bf16.msra.mxu0 %v1112_v7 }
 0x245   :  { %817 = vmatprep.subr.bf16.mxu0 %v1117_v8 }
 0x248   :  { %818 = vmatpush1.bf16.msra.mxu0 %v1115_v9 }
 0x249   :  { %819 = vmatprep.subr.bf16.mxu0 %v1120_v10 }
 0x24c   :  { %820 = vmatpush1.bf16.msra.mxu0 %v1118_v11 }
 0x24d   :  { %821 = vmatprep.subr.bf16.mxu0 %v1123_v12 }
 0x250   :  { %822 = vmatpush1.bf16.msra.mxu0 %v1121_v13 }
 0x251   :  { %823 = vmatprep.subr.bf16.mxu0 %v1126_v14 }
 0x254   :  { %824 = vmatpush1.bf16.msra.mxu0 %v1124_v15 }
 0x255   :  { %825 = vmatprep.subr.bf16.mxu0 %v1129_v16 }
 0x258   :  { %826 = vmatpush1.bf16.msra.mxu0 %v1127_v17 }
 0x259   :  { %827 = vmatprep.subr.bf16.mxu0 %v1132_v18 }
 0x25c   :  { %828 = vmatpush1.bf16.msra.mxu0 %v1130_v19 }
 0x25d   :  { %829 = vmatprep.subr.bf16.mxu0 %v1135_v20 }
 0x260   :  { %830 = vmatpush1.bf16.msra.mxu0 %v1133_v21 }
 0x261   :  { %831 = vmatprep.subr.bf16.mxu0 %v1138_v22 }
 0x264   :  { %832 = vmatpush1.bf16.msra.mxu0 %v1136_v23 }
 0x265   :  { %833 = vmatprep.subr.bf16.mxu0 %v1141_v32 }
 0x268   :  { %834 = vmatpush1.bf16.msra.mxu0 %v1139_v33 }
 0x269   :  { %835 = vmatprep.subr.bf16.mxu0 %v1144_v34 }
 0x26c   :  { %836 = vmatpush1.bf16.msra.mxu0 %v1142_v35 }
 0x302   :  { %v440_v25 = vpop.f32.mrb[0].mxu0 }
 0x303   :  { %v441_v26 = vadd.f32 %v893_v24, %v440_v25  ;;  %v1035_v27 = vpop.f32.mrb[1].mxu0 }
 0x304   :  { %v443_v28 = vpop.f32.mrb[2].mxu0 }
 0x305   :  { %v446_v29 = vmax.f32 %v441_v26, 0.0  ;;  %v1036_v30 = vpop.f32.mrb[3].mxu0 }
 0x307   :  { %v464_v31 = vpack.c.bf16 %v446_v29, %v446_v29 }
 0x309   :  { %589 = vmatmul.mubr.bf16.vlgmr.msra.gmra.mrb[8].mxu1 %v464_v31 }
 0x3dc   :  { %v590_v43 = vpop.f32.mrb[8].mxu1 }
 0x3dd   :  { %v591_v44 = vadd.f32 %v590_v43, %v469_v41  ;;  %v592_v45 = vpop.f32.mrb[9].mxu1 }
 0x3de   :  { %v593_v46 = vadd.f32 %v592_v45, %v473_v42  ;;  %v594_v47 = vpop.f32.mrb[10].mxu1 }
 0x3df   :  { %v597_v48 = vmax.f32 %v591_v44, 0.0  ;;  %v595_v49 = vpop.f32.mrb[11].mxu1 }
 0x3e0   :  { %v598_v50 = vmax.f32 %v593_v46, 0.0 }
 0x3e1   :  { %v632_v52 = vpack.c.bf16 %v597_v48, %v597_v48 }
 0x3e2   :  { %v633_v51 = vpack.c.bf16 %v598_v50, %v598_v50 }
 0x3e4   :  { %837 = vmatprep.mubr.bf16.mxu0 %v633_v51 }
 0x3e5   :  { %838 = vmatmul.mubr.bf16.vlgmr.msra.gmra.mrb[4].mxu0 %v632_v52 }
 0x4b8   :  { %v839_v56 = vpop.f32.mrb[4].mxu0 }
 0x4b9   :  { %v840_v57 = vadd.f32 %v839_v56, %v638_v54  ;;  %v841_v58 = vpop.f32.mrb[5].mxu0 }
 0x4ba   :  { %v842_v59 = vadd.f32 %v841_v58, %v642_v55  ;;  %v843_v60 = vpop.f32.mrb[6].mxu0 }
 0x4bb   :  { %v846_v61 = vand.u32 2147483647, %v840_v57  ;;  %v844_v62 = vpop.f32.mrb[7].mxu0  ;;  %vm854_vm1 = vcmp.ge.f32.partialorder %v840_v57, 0.0 }
 0x4bc   :  { %v847_v63 = vand.u32 2147483647, %v842_v59  ;;  %vm855_vm2 = vcmp.ge.f32.partialorder %v842_v59, 0.0 }
 0x4bd   :  { %v848_v0 = vsub.f32 0.0, %v846_v61 }
 0x4be   :  { %v849_v1 = vsub.f32 0.0, %v847_v63 }
 0x4bf   :  { %v850_v2 = vmul.f32 1.442695, %v848_v0 }
 0x4c0   :  { %v852_v3 = vmul.f32 1.442695, %v849_v1 }
 0x4c1   :  { %1145 = vpow2.f32 %v850_v2 }
 0x4c2   :  { %1147 = vpow2.f32 %v852_v3 }
 0x4cb   :  { %v1146_v4 = vpop.eup %1145 }
 0x4cc   :  { %v1148_v5 = vpop.eup %1147  ;;  %v856_v6 = vadd.f32 1.0, %v1146_v4 }
 0x4cd   :  { %v857_v7 = vadd.f32 1.0, %v1148_v5 }
 0x4ce   :  { %1149 = vrcp.f32 %v856_v6 }
 0x4cf   :  { %1151 = vrcp.f32 %v857_v7 }
 0x4d8   :  { %v1150_v8 = vpop.eup %1149 }
 0x4d9   :  { %v1152_v9 = vpop.eup %1151  ;;  %v862_v10 = vmul.f32 %v1150_v8, %v1146_v4 }
 0x4da   :  { %v863_v11 = vmul.f32 %v1152_v9, %v1148_v5 }
 0x4db   :  { %v864_v12 = vsel %vm854_vm1, %v1150_v8, %v862_v10 }
 0x4dc   :  { %866 = vst [vmem:[%s1495_s11] sm:$0xff] %v864_v12  ;;  %v865_v13 = vsel %vm855_vm2, %v1152_v9, %v863_v11 }
 0x4dd   :  { %867 = vst [vmem:[%s1495_s11 + $0x8] sm:$0xff] %v865_v13 }
 0x4de   :  { %872 = vsyncpa [#allocation3], 1 }
 0x4df   :  { %873 = vsyncpa [#allocation5], 1 }
 0x4e0   :  { %874 = vsyncpa [#allocation8], 1 }

</bundles_post_ra>
